<compile_context>
chip_gen: v5e
topology: v5e:2x2
jax: 0.10.0
libtpu: 0.0.40
codegen_flags: <defaults>
</compile_context>

<pallas_src>
import functools

import jax
import jax.numpy as jnp
from jax.experimental import pallas as pl
from jax.experimental.pallas import tpu as pltpu


# ---------------------------------------------------------------------------
# Generation-aware VMEM budgeting.
# ---------------------------------------------------------------------------
def _vmem_budget_bytes():
    """Returns (per-step block budget, vmem_limit_bytes) for the current chip."""
    phys = None
    try:
        info = pltpu.get_tpu_info()
        for name in ("vmem_capacity_bytes", "vmem_size_bytes", "vmem_bytes"):
            v = getattr(info, name, None)
            if isinstance(v, int) and v > 0:
                phys = v
                break
    except Exception:
        phys = None
    if phys is not None and phys >= 128 * 1024 * 1024:      # v5e / v6e
        return 40 * 1024 * 1024, 64 * 1024 * 1024
    # v7x (64 MiB physical VMEM) or unknown: stay conservative.
    return 20 * 1024 * 1024, 32 * 1024 * 1024


# ---------------------------------------------------------------------------
# VPU path (small channel counts): per-mode broadcast multiply, register acc.
# ---------------------------------------------------------------------------
def _spectral_vpu_kernel(xr_ref, xi_ref, wr_ref, wi_ref, or_ref, oi_ref,
                         *, ci, co, rows, unroll):
    """Complex mode-wise contraction on split real/imag planes.

    xr_ref/xi_ref : (tb, ci, mt)   Re / Im of x_ft modes
    wr_ref/wi_ref : (ci, co, mt)   Re / Im of weights
    or_ref/oi_ref : (tb, co, mt)   Re / Im of output modes
    """
    tb = or_ref.shape[0]
    mt = or_ref.shape[-1]
    n_row_blocks = tb // rows

    def row_block(rb, _):
        r0 = pl.multiple_of(rb * rows, rows)

        def body(i, carry):
            acc_r, acc_i = carry
            xr = xr_ref[pl.ds(r0, rows), pl.ds(i, 1), :]     # (rows, 1, mt)
            xi = xi_ref[pl.ds(r0, rows), pl.ds(i, 1), :]
            wr = wr_ref[pl.ds(i, 1), :, :]                   # (1, co, mt)
            wi = wi_ref[pl.ds(i, 1), :, :]
            # (a + ib)(c + id) = (ac - bd) + i(ad + bc)
            acc_r = acc_r + xr * wr - xi * wi
            acc_i = acc_i + xr * wi + xi * wr
            return acc_r, acc_i

        zero = jnp.zeros((rows, co, mt), jnp.float32)
        acc_r, acc_i = jax.lax.fori_loop(0, ci, body, (zero, zero),
                                         unroll=unroll)
        # Exactly one store per output half per row block (no RMW in the loop).
        or_ref[pl.ds(r0, rows), :, :] = acc_r
        oi_ref[pl.ds(r0, rows), :, :] = acc_i
        return 0

    jax.lax.fori_loop(0, n_row_blocks, row_block, 0)


def _pick_batch_tile(B, Ci, Co, mt, budget):
    cands = [c for c in (128, 64, 32, 16, 8) if B % c == 0]
    if B >= 16:
        # Prefer >=2 batch tiles (pipelining depth, 2 TensorCores on v7x).
        halved = [c for c in cands if c <= B // 2]
        cands = halved or cands
    if not cands:
        cands = [B]

    def need_bytes(tb):
        x_blk = 2 * tb * Ci * mt          # xr + xi blocks
        w_blk = 2 * Ci * Co * mt          # wr + wi blocks (also double-buffered)
        o_blk = 2 * tb * Co * mt          # out_r + out_i blocks
        acc = 2 * min(tb, 8) * Co * mt    # register / spilled accumulators
        return 4 * (2 * (x_blk + w_blk + o_blk) + acc)   # f32

    for tb in cands:
        if need_bytes(tb) <= budget:
            return tb
    return cands[-1]


def _spectral_mul_vpu(xr, xi, w_real, w_imag, budget, vmem_limit):
    B, Ci, M = xr.shape
    Co = w_real.shape[1]

    # Mode tiling: full-extent block when M fits a single 128-lane tile (no
    # zero padding of the activation at all); otherwise 128-lane tiles.
    if M <= 128:
        mt, Mp = M, M
    else:
        mt = 128
        Mp = pl.cdiv(M, mt) * mt
    if Mp != M:
        pad = ((0, 0), (0, 0), (0, Mp - M))
        xr = jnp.pad(xr, pad)
        xi = jnp.pad(xi, pad)
        w_real = jnp.pad(w_real, pad)
        w_imag = jnp.pad(w_imag, pad)

    tb = _pick_batch_tile(B, Ci, Co, mt, budget)
    rows = 8 if tb % 8 == 0 else tb
    unroll = Ci if Ci <= 8 else 8

    kernel = functools.partial(_spectral_vpu_kernel, ci=Ci, co=Co, rows=rows,
                               unroll=unroll)
    grid = (Mp // mt, B // tb)

    out_r, out_i = pl.pallas_call(
        kernel,
        out_shape=(jax.ShapeDtypeStruct((B, Co, Mp), jnp.float32),
                   jax.ShapeDtypeStruct((B, Co, Mp), jnp.float32)),
        grid=grid,
        in_specs=[
            pl.BlockSpec((tb, Ci, mt), lambda m, b: (b, 0, m)),
            pl.BlockSpec((tb, Ci, mt), lambda m, b: (b, 0, m)),
            # Weight block index is constant along the inner batch axis, so the
            # weights stay VMEM resident across batch tiles.
            pl.BlockSpec((Ci, Co, mt), lambda m, b: (0, 0, m)),
            pl.BlockSpec((Ci, Co, mt), lambda m, b: (0, 0, m)),
        ],
        out_specs=(
            pl.BlockSpec((tb, Co, mt), lambda m, b: (b, 0, m)),
            pl.BlockSpec((tb, Co, mt), lambda m, b: (b, 0, m)),
        ),
        compiler_params=pltpu.CompilerParams(
            dimension_semantics=("parallel", "parallel"),
            vmem_limit_bytes=vmem_limit),
    )(xr, xi, w_real, w_imag)

    if Mp != M:
        out_r = out_r[:, :, :M]
        out_i = out_i[:, :, :M]
    return out_r, out_i


# ---------------------------------------------------------------------------
# MXU path (non-trivial channel counts): per-mode real-block matmul.
# ---------------------------------------------------------------------------
def _spectral_mxu_kernel(x_ref, w_ref, o_ref):
    """Per-mode real-block matmul on the MXU.

    x_ref : (mt, tb, 2*Ci)    [Re(x_ft) ; Im(x_ft)] along the last axis
    w_ref : (mt, 2*Ci, 2*Co)  [[Wr, Wi], [-Wi, Wr]] real-block weights
    o_ref : (mt, tb, 2*Co)    [Re(out) ; Im(out)]
    """
    o_ref[...] = jnp.einsum('mbi,mio->mbo', x_ref[...], w_ref[...],
                            preferred_element_type=jnp.float32)


def _spectral_mul_mxu(xr, xi, w_real, w_imag, budget, vmem_limit):
    B, Ci, M = xr.shape
    Co = w_real.shape[1]

    # Mode-major layouts: one (tb x 2Ci) @ (2Ci x 2Co) matmul per kept mode.
    x_m = jnp.transpose(jnp.concatenate([xr, xi], axis=1), (2, 0, 1))        # (M,B,2Ci)
    w_top = jnp.concatenate([w_real, w_imag], axis=1)                        # (Ci,2Co,M)
    w_bot = jnp.concatenate([-w_imag, w_real], axis=1)                       # (Ci,2Co,M)
    w_m = jnp.transpose(jnp.concatenate([w_top, w_bot], axis=0), (2, 0, 1))  # (M,2Ci,2Co)

    tb = next((c for c in (128, 64, 32, 16, 8) if B % c == 0), B)

    def blocks_bytes(mt):
        x_blk = mt * tb * 2 * Ci
        w_blk = mt * 2 * Ci * 2 * Co
        o_blk = mt * tb * 2 * Co
        return 4 * 2 * (x_blk + w_blk + o_blk)   # f32, double-buffered

    mt = next((c for c in (32, 16, 8, 4, 2, 1) if blocks_bytes(c) <= budget), 1)
    mt = min(mt, M)
    Mp = pl.cdiv(M, mt) * mt
    if Mp != M:
        x_m = jnp.pad(x_m, ((0, Mp - M), (0, 0), (0, 0)))
        w_m = jnp.pad(w_m, ((0, Mp - M), (0, 0), (0, 0)))

    out = pl.pallas_call(
        _spectral_mxu_kernel,
        out_shape=jax.ShapeDtypeStruct((Mp, B, 2 * Co), jnp.float32),
        grid=(Mp // mt, B // tb),
        in_specs=[
            pl.BlockSpec((mt, tb, 2 * Ci), lambda m, b: (m, b, 0)),
            pl.BlockSpec((mt, 2 * Ci, 2 * Co), lambda m, b: (m, 0, 0)),
        ],
        out_specs=pl.BlockSpec((mt, tb, 2 * Co), lambda m, b: (m, b, 0)),
        compiler_params=pltpu.CompilerParams(
            dimension_semantics=("parallel", "parallel"),
            vmem_limit_bytes=vmem_limit),
    )(x_m, w_m)

    out = jnp.transpose(out[:M], (1, 2, 0))   # (B, 2Co, M)
    return out[:, :Co, :], out[:, Co:, :]


# ---------------------------------------------------------------------------
# Module forward.
# ---------------------------------------------------------------------------
def spectral_conv1d(x, w_real, w_imag, modes1):
    """Forward pass of SpectralConv1d.

    x       : (B, C_in, N) float32
    w_real  : (C_in, C_out, modes1) float32
    w_imag  : (C_in, C_out, modes1) float32
    returns : (B, C_out, N) float32
    """
    B, Ci, N = x.shape
    Co = w_real.shape[1]
    n_freq = N // 2 + 1
    M = modes1

    # TODO(synk): rfft/irfft have no Pallas TPU primitive; they stay in XLA.
    x_ft = jnp.fft.rfft(x, axis=-1)                     # (B, Ci, N//2+1) complex64
    xm = x_ft[:, :, :M]
    xr = jnp.real(xm).astype(jnp.float32)
    xi = jnp.imag(xm).astype(jnp.float32)

    w_real = w_real.astype(jnp.float32)
    w_imag = w_imag.astype(jnp.float32)
    budget, vmem_limit = _vmem_budget_bytes()

    # MXU real-block matmul once channel widths are non-trivial; VPU broadcast
    # path with register accumulators for small channel counts.
    if Co > 8 or Ci > 32:
        out_r, out_i = _spectral_mul_mxu(xr, xi, w_real, w_imag, budget, vmem_limit)
    else:
        out_r, out_i = _spectral_mul_vpu(xr, xi, w_real, w_imag, budget, vmem_limit)

    out_modes = jax.lax.complex(out_r, out_i)           # (B, Co, M) complex64
    out_ft = jax.lax.dynamic_update_slice(
        jnp.zeros((B, Co, n_freq), dtype=jnp.complex64), out_modes, (0, 0, 0))
    return jnp.fft.irfft(out_ft, n=N, axis=-1).astype(jnp.float32)


def init_spectral_conv1d_params(key, in_channels, out_channels, modes1):
    """Matches: scale * torch.rand(in, out, modes1, dtype=cfloat)."""
    scale = 1.0 / (in_channels * out_channels)
    kr, ki = jax.random.split(key)
    w_real = scale * jax.random.uniform(
        kr, (in_channels, out_channels, modes1), dtype=jnp.float32)
    w_imag = scale * jax.random.uniform(
        ki, (in_channels, out_channels, modes1), dtype=jnp.float32)
    return w_real, w_imag


def _reference_forward(x, w_real, w_imag, modes1):
    """Pure-JAX reference (mirrors the PyTorch forward exactly)."""
    B, Ci, N = x.shape
    Co = w_real.shape[1]
    n_freq = N // 2 + 1
    x_ft = jnp.fft.rfft(x, axis=-1)
    w = (w_real + 1j * w_imag).astype(jnp.complex64)
    out_modes = jnp.einsum('bix,iox->box', x_ft[:, :, :modes1], w,
                           precision=jax.lax.Precision.HIGHEST)
    out_ft = jnp.zeros((B, Co, n_freq), dtype=jnp.complex64)
    out_ft = out_ft.at[:, :, :modes1].set(out_modes)
    return jnp.fft.irfft(out_ft, n=N, axis=-1)


if __name__ == "__main__":
    fwd = jax.jit(spectral_conv1d, static_argnums=3)

    # (B, C_in, C_out, N, modes1, atol): first config is the module's small
    # smoke-test shape (VPU path); the others exercise the MXU path, mode
    # padding and multi-tile grids.
    configs = [
        (2, 4, 4, 16, 8, 1e-5),
        (16, 32, 32, 192, 90, 3e-3),
        (16, 4, 4, 512, 200, 1e-3),
    ]
    for idx, (B, CI, CO, N, M, tol) in enumerate(configs):
        key = jax.random.PRNGKey(0)
        k_x, k_w = jax.random.split(key)
        x = jax.random.normal(k_x, (B, CI, N), dtype=jnp.float32)
        w_real, w_imag = init_spectral_conv1d_params(k_w, CI, CO, M)

        out = jax.block_until_ready(fwd(x, w_real, w_imag, M))
        ref = jax.block_until_ready(_reference_forward(x, w_real, w_imag, M))
        assert out.shape == (B, CO, N), (idx, out.shape)
        err = float(jnp.max(jnp.abs(out - ref)))
        assert err <= tol, (idx, err)

    print("KERNEL_OK")
</pallas_src>

<mosaic_0001>
module attributes {stable_mosaic.version = 11 : i64} {
  func.func @_spectral_vpu_kernel(%arg0: i32, %arg1: i32, %arg2: memref<2x4x8xf32, #tpu.memory_space<vmem>>, %arg3: memref<2x4x8xf32, #tpu.memory_space<vmem>>, %arg4: memref<4x4x8xf32, #tpu.memory_space<vmem>>, %arg5: memref<4x4x8xf32, #tpu.memory_space<vmem>>, %arg6: memref<2x4x8xf32, #tpu.memory_space<vmem>>, %arg7: memref<2x4x8xf32, #tpu.memory_space<vmem>>) attributes {dimension_semantics = [#tpu.dimension_semantics<parallel>, #tpu.dimension_semantics<parallel>], iteration_bounds = array<i64: 1, 1>, scalar_prefetch = 0 : i64, scratch_operands = 0 : i64, tpu.core_type = #tpu.core_type<tc>, window_params = [{transform_indices = @transform_0, window_bounds = array<i64: 2, 4, 8>}, {transform_indices = @transform_1, window_bounds = array<i64: 2, 4, 8>}, {transform_indices = @transform_2, window_bounds = array<i64: 4, 4, 8>}, {transform_indices = @transform_3, window_bounds = array<i64: 4, 4, 8>}, {transform_indices = @transform_4, window_bounds = array<i64: 2, 4, 8>}, {transform_indices = @transform_5, window_bounds = array<i64: 2, 4, 8>}]} {
    %c0_i32 = arith.constant 0 : i32
    %c2_i32 = arith.constant 2 : i32
    %0 = arith.muli %c0_i32, %c2_i32 : i32
    %1 = tpu.assume_multiple %0, 2 : i32
    %cst = arith.constant 0.000000e+00 : f32
    %2 = vector.broadcast %cst : f32 to vector<2x4x8xf32>
    %c0_i32_0 = arith.constant 0 : i32
    %3 = arith.index_cast %1 : i32 to index
    %4 = arith.index_cast %c0_i32_0 : i32 to index
    %c0 = arith.constant 0 : index
    %5 = vector.load %arg2[%3, %4, %c0] : memref<2x4x8xf32, #tpu.memory_space<vmem>>, vector<2x1x8xf32>
    %6 = arith.index_cast %1 : i32 to index
    %7 = arith.index_cast %c0_i32_0 : i32 to index
    %c0_1 = arith.constant 0 : index
    %8 = vector.load %arg3[%6, %7, %c0_1] : memref<2x4x8xf32, #tpu.memory_space<vmem>>, vector<2x1x8xf32>
    %9 = arith.index_cast %c0_i32_0 : i32 to index
    %c0_2 = arith.constant 0 : index
    %c0_3 = arith.constant 0 : index
    %10 = vector.load %arg4[%9, %c0_2, %c0_3] : memref<4x4x8xf32, #tpu.memory_space<vmem>>, vector<1x4x8xf32>
    %11 = arith.index_cast %c0_i32_0 : i32 to index
    %c0_4 = arith.constant 0 : index
    %c0_5 = arith.constant 0 : index
    %12 = vector.load %arg5[%11, %c0_4, %c0_5] : memref<4x4x8xf32, #tpu.memory_space<vmem>>, vector<1x4x8xf32>
    %13 = vector.broadcast %5 : vector<2x1x8xf32> to vector<2x4x8xf32>
    %14 = vector.broadcast %10 : vector<1x4x8xf32> to vector<2x4x8xf32>
    %15 = arith.mulf %13, %14 : vector<2x4x8xf32>
    %16 = arith.addf %2, %15 : vector<2x4x8xf32>
    %17 = vector.broadcast %8 : vector<2x1x8xf32> to vector<2x4x8xf32>
    %18 = vector.broadcast %12 : vector<1x4x8xf32> to vector<2x4x8xf32>
    %19 = arith.mulf %17, %18 : vector<2x4x8xf32>
    %20 = arith.subf %16, %19 : vector<2x4x8xf32>
    %21 = vector.broadcast %5 : vector<2x1x8xf32> to vector<2x4x8xf32>
    %22 = vector.broadcast %12 : vector<1x4x8xf32> to vector<2x4x8xf32>
    %23 = arith.mulf %21, %22 : vector<2x4x8xf32>
    %24 = arith.addf %2, %23 : vector<2x4x8xf32>
    %25 = vector.broadcast %8 : vector<2x1x8xf32> to vector<2x4x8xf32>
    %26 = vector.broadcast %10 : vector<1x4x8xf32> to vector<2x4x8xf32>
    %27 = arith.mulf %25, %26 : vector<2x4x8xf32>
    %28 = arith.addf %24, %27 : vector<2x4x8xf32>
    %c1_i32 = arith.constant 1 : i32
    %29 = arith.index_cast %1 : i32 to index
    %30 = arith.index_cast %c1_i32 : i32 to index
    %c0_6 = arith.constant 0 : index
    %31 = vector.load %arg2[%29, %30, %c0_6] : memref<2x4x8xf32, #tpu.memory_space<vmem>>, vector<2x1x8xf32>
    %32 = arith.index_cast %1 : i32 to index
    %33 = arith.index_cast %c1_i32 : i32 to index
    %c0_7 = arith.constant 0 : index
    %34 = vector.load %arg3[%32, %33, %c0_7] : memref<2x4x8xf32, #tpu.memory_space<vmem>>, vector<2x1x8xf32>
    %35 = arith.index_cast %c1_i32 : i32 to index
    %c0_8 = arith.constant 0 : index
    %c0_9 = arith.constant 0 : index
    %36 = vector.load %arg4[%35, %c0_8, %c0_9] : memref<4x4x8xf32, #tpu.memory_space<vmem>>, vector<1x4x8xf32>
    %37 = arith.index_cast %c1_i32 : i32 to index
    %c0_10 = arith.constant 0 : index
    %c0_11 = arith.constant 0 : index
    %38 = vector.load %arg5[%37, %c0_10, %c0_11] : memref<4x4x8xf32, #tpu.memory_space<vmem>>, vector<1x4x8xf32>
    %39 = vector.broadcast %31 : vector<2x1x8xf32> to vector<2x4x8xf32>
    %40 = vector.broadcast %36 : vector<1x4x8xf32> to vector<2x4x8xf32>
    %41 = arith.mulf %39, %40 : vector<2x4x8xf32>
    %42 = arith.addf %20, %41 : vector<2x4x8xf32>
    %43 = vector.broadcast %34 : vector<2x1x8xf32> to vector<2x4x8xf32>
    %44 = vector.broadcast %38 : vector<1x4x8xf32> to vector<2x4x8xf32>
    %45 = arith.mulf %43, %44 : vector<2x4x8xf32>
    %46 = arith.subf %42, %45 : vector<2x4x8xf32>
    %47 = vector.broadcast %31 : vector<2x1x8xf32> to vector<2x4x8xf32>
    %48 = vector.broadcast %38 : vector<1x4x8xf32> to vector<2x4x8xf32>
    %49 = arith.mulf %47, %48 : vector<2x4x8xf32>
    %50 = arith.addf %28, %49 : vector<2x4x8xf32>
    %51 = vector.broadcast %34 : vector<2x1x8xf32> to vector<2x4x8xf32>
    %52 = vector.broadcast %36 : vector<1x4x8xf32> to vector<2x4x8xf32>
    %53 = arith.mulf %51, %52 : vector<2x4x8xf32>
    %54 = arith.addf %50, %53 : vector<2x4x8xf32>
    %c2_i32_12 = arith.constant 2 : i32
    %55 = arith.index_cast %1 : i32 to index
    %56 = arith.index_cast %c2_i32_12 : i32 to index
    %c0_13 = arith.constant 0 : index
    %57 = vector.load %arg2[%55, %56, %c0_13] : memref<2x4x8xf32, #tpu.memory_space<vmem>>, vector<2x1x8xf32>
    %58 = arith.index_cast %1 : i32 to index
    %59 = arith.index_cast %c2_i32_12 : i32 to index
    %c0_14 = arith.constant 0 : index
    %60 = vector.load %arg3[%58, %59, %c0_14] : memref<2x4x8xf32, #tpu.memory_space<vmem>>, vector<2x1x8xf32>
    %61 = arith.index_cast %c2_i32_12 : i32 to index
    %c0_15 = arith.constant 0 : index
    %c0_16 = arith.constant 0 : index
    %62 = vector.load %arg4[%61, %c0_15, %c0_16] : memref<4x4x8xf32, #tpu.memory_space<vmem>>, vector<1x4x8xf32>
    %63 = arith.index_cast %c2_i32_12 : i32 to index
    %c0_17 = arith.constant 0 : index
    %c0_18 = arith.constant 0 : index
    %64 = vector.load %arg5[%63, %c0_17, %c0_18] : memref<4x4x8xf32, #tpu.memory_space<vmem>>, vector<1x4x8xf32>
    %65 = vector.broadcast %57 : vector<2x1x8xf32> to vector<2x4x8xf32>
    %66 = vector.broadcast %62 : vector<1x4x8xf32> to vector<2x4x8xf32>
    %67 = arith.mulf %65, %66 : vector<2x4x8xf32>
    %68 = arith.addf %46, %67 : vector<2x4x8xf32>
    %69 = vector.broadcast %60 : vector<2x1x8xf32> to vector<2x4x8xf32>
    %70 = vector.broadcast %64 : vector<1x4x8xf32> to vector<2x4x8xf32>
    %71 = arith.mulf %69, %70 : vector<2x4x8xf32>
    %72 = arith.subf %68, %71 : vector<2x4x8xf32>
    %73 = vector.broadcast %57 : vector<2x1x8xf32> to vector<2x4x8xf32>
    %74 = vector.broadcast %64 : vector<1x4x8xf32> to vector<2x4x8xf32>
    %75 = arith.mulf %73, %74 : vector<2x4x8xf32>
    %76 = arith.addf %54, %75 : vector<2x4x8xf32>
    %77 = vector.broadcast %60 : vector<2x1x8xf32> to vector<2x4x8xf32>
    %78 = vector.broadcast %62 : vector<1x4x8xf32> to vector<2x4x8xf32>
    %79 = arith.mulf %77, %78 : vector<2x4x8xf32>
    %80 = arith.addf %76, %79 : vector<2x4x8xf32>
    %c3_i32 = arith.constant 3 : i32
    %81 = arith.index_cast %1 : i32 to index
    %82 = arith.index_cast %c3_i32 : i32 to index
    %c0_19 = arith.constant 0 : index
    %83 = vector.load %arg2[%81, %82, %c0_19] : memref<2x4x8xf32, #tpu.memory_space<vmem>>, vector<2x1x8xf32>
    %84 = arith.index_cast %1 : i32 to index
    %85 = arith.index_cast %c3_i32 : i32 to index
    %c0_20 = arith.constant 0 : index
    %86 = vector.load %arg3[%84, %85, %c0_20] : memref<2x4x8xf32, #tpu.memory_space<vmem>>, vector<2x1x8xf32>
    %87 = arith.index_cast %c3_i32 : i32 to index
    %c0_21 = arith.constant 0 : index
    %c0_22 = arith.constant 0 : index
    %88 = vector.load %arg4[%87, %c0_21, %c0_22] : memref<4x4x8xf32, #tpu.memory_space<vmem>>, vector<1x4x8xf32>
    %89 = arith.index_cast %c3_i32 : i32 to index
    %c0_23 = arith.constant 0 : index
    %c0_24 = arith.constant 0 : index
    %90 = vector.load %arg5[%89, %c0_23, %c0_24] : memref<4x4x8xf32, #tpu.memory_space<vmem>>, vector<1x4x8xf32>
    %91 = vector.broadcast %83 : vector<2x1x8xf32> to vector<2x4x8xf32>
    %92 = vector.broadcast %88 : vector<1x4x8xf32> to vector<2x4x8xf32>
    %93 = arith.mulf %91, %92 : vector<2x4x8xf32>
    %94 = arith.addf %72, %93 : vector<2x4x8xf32>
    %95 = vector.broadcast %86 : vector<2x1x8xf32> to vector<2x4x8xf32>
    %96 = vector.broadcast %90 : vector<1x4x8xf32> to vector<2x4x8xf32>
    %97 = arith.mulf %95, %96 : vector<2x4x8xf32>
    %98 = arith.subf %94, %97 : vector<2x4x8xf32>
    %99 = vector.broadcast %83 : vector<2x1x8xf32> to vector<2x4x8xf32>
    %100 = vector.broadcast %90 : vector<1x4x8xf32> to vector<2x4x8xf32>
    %101 = arith.mulf %99, %100 : vector<2x4x8xf32>
    %102 = arith.addf %80, %101 : vector<2x4x8xf32>
    %103 = vector.broadcast %86 : vector<2x1x8xf32> to vector<2x4x8xf32>
    %104 = vector.broadcast %88 : vector<1x4x8xf32> to vector<2x4x8xf32>
    %105 = arith.mulf %103, %104 : vector<2x4x8xf32>
    %106 = arith.addf %102, %105 : vector<2x4x8xf32>
    %c4_i32 = arith.constant 4 : i32
    %107 = arith.index_cast %1 : i32 to index
    %c0_25 = arith.constant 0 : index
    %c0_26 = arith.constant 0 : index
    %108 = vector.load %arg6[%107, %c0_25, %c0_26] : memref<2x4x8xf32, #tpu.memory_space<vmem>>, vector<2x4x8xf32>
    tpu.vector_store %arg6[%107, %c0_25, %c0_26], %98 {strides = array<i32>} : memref<2x4x8xf32, #tpu.memory_space<vmem>>, vector<2x4x8xf32>,
    %109 = arith.index_cast %1 : i32 to index
    %c0_27 = arith.constant 0 : index
    %c0_28 = arith.constant 0 : index
    %110 = vector.load %arg7[%109, %c0_27, %c0_28] : memref<2x4x8xf32, #tpu.memory_space<vmem>>, vector<2x4x8xf32>
    tpu.vector_store %arg7[%109, %c0_27, %c0_28], %106 {strides = array<i32>} : memref<2x4x8xf32, #tpu.memory_space<vmem>>, vector<2x4x8xf32>,
    %c1_i32_29 = arith.constant 1 : i32
    return
  }
  func.func @transform_0(%arg0: i32, %arg1: i32) -> (i32, i32, i32) {
    %c0_i32 = arith.constant 0 : i32
    %c0_i32_0 = arith.constant 0 : i32
    return %arg1, %c0_i32, %arg0 : i32, i32, i32
  }
  func.func @transform_1(%arg0: i32, %arg1: i32) -> (i32, i32, i32) {
    %c0_i32 = arith.constant 0 : i32
    %c0_i32_0 = arith.constant 0 : i32
    return %arg1, %c0_i32, %arg0 : i32, i32, i32
  }
  func.func @transform_2(%arg0: i32, %arg1: i32) -> (i32, i32, i32) {
    %c0_i32 = arith.constant 0 : i32
    %c0_i32_0 = arith.constant 0 : i32
    %c0_i32_1 = arith.constant 0 : i32
    return %c0_i32, %c0_i32_0, %arg0 : i32, i32, i32
  }
  func.func @transform_3(%arg0: i32, %arg1: i32) -> (i32, i32, i32) {
    %c0_i32 = arith.constant 0 : i32
    %c0_i32_0 = arith.constant 0 : i32
    %c0_i32_1 = arith.constant 0 : i32
    return %c0_i32, %c0_i32_0, %arg0 : i32, i32, i32
  }
  func.func @transform_4(%arg0: i32, %arg1: i32) -> (i32, i32, i32) {
    %c0_i32 = arith.constant 0 : i32
    %c0_i32_0 = arith.constant 0 : i32
    return %arg1, %c0_i32, %arg0 : i32, i32, i32
  }
  func.func @transform_5(%arg0: i32, %arg1: i32) -> (i32, i32, i32) {
    %c0_i32 = arith.constant 0 : i32
    %c0_i32_0 = arith.constant 0 : i32
    return %arg1, %c0_i32, %arg0 : i32, i32, i32
  }
}

</mosaic_0001>

<bundles_post_ra>
// kernel: reverse.1
= control target key start
LH: loop header
LB: loop body
LE: loop exit
PB: predicated region body
PF: predicated region fallthrough
CT: control target
= control target key end

     0   :  { %v2_v0 = vlaneseq  ;;  %s152_s0 = inlined_call_operand.vmem [shape: f32[2,4,7], index: 0, kind: input, shape index: {}]   ;;  %s153_s1 = inlined_call_operand.vmem [shape: f32[2,4,7], index: 1, kind: output, shape index: {}]  }
   0x2   :  { %v3_v1 = vsub.s32 6, %v2_v0 }
   0x4   :  { %4 = vset.pattern.permute.xlu0 %v3_v1 }
   0x5   :  { %v21_v2 = vld [vmem:[%s152_s0] sm:$0xff]  }
   0x6   :  { %22 = vst [vmem:[#allocation1] sm:$0xff] %v21_v2  }
   0xd   :  { %v56_v3 = vld [vmem:[#allocation1] sm:$0xf]  ;;  %v53_v4 = vld [vmem:[#allocation1 + $0x4] sm:$0xf] }
   0xe   :  { %57 = vst [vmem:[#allocation0] sm:$0xf] %v56_v3 }
   0xf   :  { %55 = vst [vmem:[#allocation0 + $0x8] sm:$0xf] %v53_v4 }
  0x15   :  { %v58_v5 = vld [vmem:[#allocation0] sm:$0xff] }
  0x16   :  { %59 = vperm.xlu0 %4, %v58_v5   ;;  %v64_v6 = vld [vmem:[#allocation0 + $0x8] sm:$0xff] }
  0x1e   :  { %65 = vperm.xlu0 %4, %v64_v6  }
  0x88   :  { %v60_v7 = vpop.permute.xlu0 %59 }
  0x89   :  { %61 = vst [vmem:[#allocation2 + $0x8] sm:$0xff] %v60_v7 }
  0x90   :  { %v70_v8 = vld [vmem:[#allocation2 + $0x8] sm:$0xf]  ;;  %v66_v9 = vpop.permute.xlu0 %65 }
  0x91   :  { %73 = vst [vmem:[#allocation3] sm:$0xf] %v70_v8 }
  0x92   :  { %67 = vst [vmem:[#allocation2] sm:$0xff] %v66_v9 }
  0x98   :  { %v96_v10 = vld [vmem:[#allocation3] sm:$0xf] }
  0x99   :  { %97 = vst [vmem:[%s153_s1] sm:$0xf] %v96_v10  ;;  %v75_v11 = vld [vmem:[#allocation2] sm:$0xf] }
  0x9a   :  { %79 = vst [vmem:[#allocation3 + $0x4] sm:$0xf] %v75_v11 }
  0xa1   :  { %v98_v12 = vld [vmem:[#allocation3 + $0x4] sm:$0xf] }
  0xa2   :  { %99 = vst [vmem:[%s153_s1 + $0x4] sm:$0xf] %v98_v12 }

// kernel: spectral_conv1d.1
= control target key start
LH: loop header
LB: loop body
LE: loop exit
PB: predicated region body
PF: predicated region fallthrough
CT: control target
= control target key end

     0   :  { %vm133_vm0 = vcmask 60416   ;;  %s293_s0 = inlined_call_operand.vmem [shape: f32[2,4,8], index: 0, kind: input, shape index: {}]   ;;  %s294_s1 = inlined_call_operand.vmem [shape: f32[2,4,8], index: 1, kind: input, shape index: {}]   ;;  %s295_s2 = inlined_call_operand.vmem [shape: f32[4,4,8], index: 2, kind: input, shape index: {}]   ;;  %s296_s3 = inlined_call_operand.vmem [shape: f32[4,4,8], index: 3, kind: input, shape index: {}]   ;;  %s297_s4 = inlined_call_operand.vmem [shape: f32[2,4,8], index: 4, kind: output, shape index: {0}]   ;;  %s298_s5 = inlined_call_operand.vmem [shape: f32[2,4,8], index: 5, kind: output, shape index: {1}]  }
   0x1   :  { %v26_v0 = vld [vmem:[%s295_s2] sm:$0xf]  ;;  %v147_v4 = vld [vmem:[%s295_s2 + $0x4] sm:$0xf]  ;;  %v149_v12 = vld [vmem:[%s295_s2 + $0x8] sm:$0xf] }
   0x2   :  { %v27_v1 = vld [vmem:[%s296_s3] sm:$0xf]  ;;  %v148_v7 = vld [vmem:[%s296_s3 + $0x4] sm:$0xf]  ;;  %v150_v16 = vld [vmem:[%s296_s3 + $0x8] sm:$0xf] }
   0x3   :  { %v153_v2 = vld [vmem:[%s293_s0] ss:$0 sm:$0xff]  ;;  %v155_v8 = vld [vmem:[%s293_s0 + $0x1] ss:$0 sm:$0xff]  ;;  %v157_v17 = vld [vmem:[%s293_s0 + $0x2] ss:$0 sm:$0xff] }
   0x4   :  { %v154_v3 = vld [vmem:[%s294_s1] ss:$0 sm:$0xff]  ;;  %v30_v5 = vmul.f32 %v153_v2, %v26_v0  ;;  %v156_v9 = vld [vmem:[%s294_s1 + $0x1] ss:$0 sm:$0xff]  ;;  %v40_v10 = vmul.f32 %v153_v2, %v27_v1  ;;  %v58_v14 = vmul.f32 %v155_v8, %v147_v4  ;;  %v158_v18 = vld [vmem:[%s294_s1 + $0x2] ss:$0 sm:$0xff]  ;;  %v68_v21 = vmul.f32 %v155_v8, %v148_v7 }
   0x5   :  { %v36_v6 = vmul.f32 %v154_v3, %v27_v1  ;;  %v44_v11 = vmul.f32 %v154_v3, %v26_v0  ;;  %v64_v15 = vmul.f32 %v156_v9, %v148_v7  ;;  %v238_v20 = vld [vmem:[%s295_s2 + $0xc] sm:$0xf]  ;;  %v72_v22 = vmul.f32 %v156_v9, %v147_v4  ;;  %v159_v26 = vld [vmem:[%s293_s0 + $0x3] ss:$0 sm:$0xff]  ;;  %v161_v28 = vld [vmem:[%s293_s0 + $0x4] ss:$0 sm:$0xff] }
   0x6   :  { %v86_v24 = vmul.f32 %v157_v17, %v149_v12  ;;  %v152_v25 = vld [vmem:[%s296_s3 + $0xc] sm:$0xf]  ;;  %v160_v27 = vld [vmem:[%s294_s1 + $0x3] ss:$0 sm:$0xff]  ;;  %v96_v30 = vmul.f32 %v157_v17, %v150_v16  ;;  %v92_v32 = vmul.f32 %v158_v18, %v150_v16  ;;  %v162_v33 = vld [vmem:[%s294_s1 + $0x4] ss:$0 sm:$0xff]  ;;  %v31_v34 = vmul.f32 %v161_v28, %v26_v0 }
   0x7   :  { %v38_v13 = vsub.f32 %v30_v5, %v36_v6  ;;  %v46_v19 = vadd.f32 %v44_v11, %v40_v10  ;;  %v163_v35 = vld [vmem:[%s293_s0 + $0x5] ss:$0 sm:$0xff]  ;;  %v100_v38 = vmul.f32 %v158_v18, %v149_v12  ;;  %v41_v39 = vmul.f32 %v161_v28, %v27_v1  ;;  %v165_v43 = vld [vmem:[%s293_s0 + $0x6] ss:$0 sm:$0xff]  ;;  %v167_v61 = vld [vmem:[%s293_s0 + $0x7] ss:$0 sm:$0xff] }
   0x8   :  { %v164_v36 = vld [vmem:[%s294_s1 + $0x5] ss:$0 sm:$0xff]  ;;  %v114_v41 = vmul.f32 %v159_v26, %v238_v20  ;;  %v37_v42 = vmul.f32 %v162_v33, %v27_v1  ;;  %v45_v44 = vmul.f32 %v162_v33, %v26_v0  ;;  %v59_v45 = vmul.f32 %v163_v35, %v147_v4  ;;  %v166_v53 = vld [vmem:[%s294_s1 + $0x6] ss:$0 sm:$0xff]  ;;  %v168_v5 = vld [vmem:[%s294_s1 + $0x7] ss:$0 sm:$0xff] }
   0x9   :  { %v60_v23 = vadd.f32 %v58_v14, %v38_v13  ;;  %v70_v29 = vadd.f32 %v68_v21, %v46_v19  ;;  %v124_v47 = vmul.f32 %v159_v26, %v152_v25  ;;  %v69_v48 = vmul.f32 %v163_v35, %v148_v7 }
   0xa   :  { %v120_v50 = vmul.f32 %v160_v27, %v152_v25  ;;  %v39_v51 = vsub.f32 %v31_v34, %v37_v42  ;;  %v65_v52 = vmul.f32 %v164_v36, %v148_v7  ;;  %v128_v55 = vmul.f32 %v160_v27, %v238_v20 }
   0xb   :  { %v66_v31 = vsub.f32 %v60_v23, %v64_v15  ;;  %v74_v37 = vadd.f32 %v72_v22, %v70_v29  ;;  %v47_v56 = vadd.f32 %v45_v44, %v41_v39  ;;  %v73_v57 = vmul.f32 %v164_v36, %v147_v4 }
   0xc   :  { %v61_v59 = vadd.f32 %v59_v45, %v39_v51  ;;  %v87_v60 = vmul.f32 %v165_v43, %v149_v12  ;;  %v97_v0 = vmul.f32 %v165_v43, %v150_v16  ;;  %v93_v3 = vmul.f32 %v166_v53, %v150_v16 }
   0xd   :  { %v88_v40 = vadd.f32 %v86_v24, %v66_v31  ;;  %v98_v46 = vadd.f32 %v96_v30, %v74_v37  ;;  %v71_v63 = vadd.f32 %v69_v48, %v47_v56  ;;  %v101_v7 = vmul.f32 %v166_v53, %v149_v12 }
   0xe   :  { %v67_v2 = vsub.f32 %v61_v59, %v65_v52  ;;  %v115_v9 = vmul.f32 %v167_v61, %v238_v20  ;;  %v125_v11 = vmul.f32 %v167_v61, %v152_v25  ;;  %v121_v14 = vmul.f32 %v168_v5, %v152_v25 }
   0xf   :  { %v94_v49 = vsub.f32 %v88_v40, %v92_v32  ;;  %v102_v54 = vadd.f32 %v100_v38, %v98_v46  ;;  %v75_v4 = vadd.f32 %v73_v57, %v71_v63  ;;  %v129_v12 = vmul.f32 %v168_v5, %v238_v20 }
  0x10   :  { %v89_v8 = vadd.f32 %v87_v60, %v67_v2 }
  0x11   :  { %v116_v58 = vadd.f32 %v114_v41, %v94_v49  ;;  %v126_v62 = vadd.f32 %v124_v47, %v102_v54  ;;  %v99_v10 = vadd.f32 %v97_v0, %v75_v4 }
  0x12   :  { %v95_v13 = vsub.f32 %v89_v8, %v93_v3 }
  0x13   :  { %v122_v1 = vsub.f32 %v116_v58, %v120_v50  ;;  %v130_v6 = vadd.f32 %v128_v55, %v126_v62  ;;  %v103_v15 = vadd.f32 %v101_v7, %v99_v10 }
  0x14   :  { %v117_v16 = vadd.f32 %v115_v9, %v95_v13 }
  0x15   :  { %134 = vst.msk [vmem:[%s297_s4] sm:$0xf] %vm133_vm0, %v122_v1  ;;  %v127_v17 = vadd.f32 %v125_v11, %v103_v15 }
  0x16   :  { %137 = vst.msk [vmem:[%s298_s5] sm:$0xf] %vm133_vm0, %v130_v6  ;;  %v123_v18 = vsub.f32 %v117_v16, %v121_v14 }
  0x17   :  { %v131_v19 = vadd.f32 %v129_v12, %v127_v17 }
  0x18   :  { %135 = vst.msk [vmem:[%s297_s4 + $0x4] sm:$0xf] %vm133_vm0, %v123_v18 }
  0x19   :  { %138 = vst.msk [vmem:[%s298_s5 + $0x4] sm:$0xf] %vm133_vm0, %v131_v19 }

</bundles_post_ra>
